<compile_context>
chip_gen: v7x
topology: tpu7x:2x2x1
jax: 0.10.0
libtpu: 0.0.40
codegen_flags: <defaults>
</compile_context>

<pallas_src>
import math
import jax
import jax.numpy as jnp
from jax.experimental import pallas as pl
from jax.experimental.pallas import tpu as pltpu

# ----------------------------- configuration -------------------------------
FEATURE_DIM = 32          # D
DIACRITIC_VOCAB = 16      # V
NUM_PROTOTYPES = 5        # P
BATCH = 2
SEQ = 8
LN_EPS = 1e-5
NORM_EPS = 1e-12          # F.normalize eps (clamp_min on the norm)
DEFAULT_BLOCK_ROWS = 1024  # x tile = 1024*32*4 B = 128 KiB


def _round_up(a, b):
    return (a + b - 1) // b * b


# ------------------------------- kernel ------------------------------------
def _adapter_kernel(x_ref, w1_ref, b1_ref, g_ref, beta_ref, w2_ref, b2_ref,
                    protocat_ref, wout_ref, bout_ref, temp_ref, out_ref):
    x = x_ref[...]                                            # [TM, D] f32

    # feature_attention: Linear -> LayerNorm -> GELU(exact) -> Linear -> Sigmoid
    h = jnp.dot(x, w1_ref[...], preferred_element_type=jnp.float32) + b1_ref[...]
    mu = jnp.mean(h, axis=-1, keepdims=True)
    var = jnp.mean((h - mu) * (h - mu), axis=-1, keepdims=True)
    h = (h - mu) * jax.lax.rsqrt(var + LN_EPS)
    h = h * g_ref[...] + beta_ref[...]
    h = 0.5 * h * (1.0 + jax.lax.erf(h * (1.0 / math.sqrt(2.0))))   # exact GELU
    h = jnp.dot(h, w2_ref[...], preferred_element_type=jnp.float32) + b2_ref[...]
    attn = jax.nn.sigmoid(h)                                  # [TM, D]

    # gate + L2 normalize: rsqrt goes to the EUP slot; clamping the squared
    # norm at eps^2 is identical to clamping the norm at eps (sqrt monotone).
    wf = x * attn
    ss = jnp.sum(wf * wf, axis=-1, keepdims=True)
    nf = wf * jax.lax.rsqrt(jnp.maximum(ss, NORM_EPS * NORM_EPS))   # [TM, D]

    # One fused prototype matmul: [TM, D] @ [D, P*V] -> [TM, P*V] (P*V = 80
    # fits one 128-lane group), then max over P via static lane slices.
    V = wout_ref.shape[0]
    P = protocat_ref.shape[1] // V
    sim = jnp.dot(nf, protocat_ref[...], preferred_element_type=jnp.float32)
    max_sim = sim[:, 0:V]
    for p in range(1, P):                                     # P static & small
        max_sim = jnp.maximum(max_sim, sim[:, p * V:(p + 1) * V])

    # output_projection with temperature folded into the resident [V, V] weight
    wout_scaled = wout_ref[...] * temp_ref[0, 0]
    out_ref[...] = (jnp.dot(max_sim, wout_scaled,
                            preferred_element_type=jnp.float32)
                    + bout_ref[...])


# ------------------------------- wrapper ------------------------------------
def few_shot_diacritic_adapter(features, params, *, block_rows=DEFAULT_BLOCK_ROWS):
    """features: [B, S, D] f32 -> logits [B, S, V] f32."""
    B, S, D = features.shape
    V = params["bout"].shape[-1]
    PV = params["protos_cat"].shape[-1]
    N = B * S
    x = features.reshape(N, D).astype(jnp.float32)

    # Row tile: multiple of 8 sublanes; pad N so the grid divides evenly.
    tm = min(_round_up(block_rows, 8), _round_up(N, 8))
    n_pad = _round_up(N, tm)
    if n_pad != N:
        x = jnp.pad(x, ((0, n_pad - N), (0, 0)))
    grid = (n_pad // tm,)

    def full(shape):                       # resident (constant block index) operand
        return pl.BlockSpec(shape, lambda i: (0, 0))

    out = pl.pallas_call(
        _adapter_kernel,
        out_shape=jax.ShapeDtypeStruct((n_pad, V), jnp.float32),
        grid_spec=pltpu.PrefetchScalarGridSpec(
            num_scalar_prefetch=0,
            grid=grid,
            in_specs=[
                pl.BlockSpec((tm, D), lambda i: (i, 0)),   # x row tile
                full((D, D)),                              # w1
                full((1, D)),                              # b1
                full((1, D)),                              # ln gamma
                full((1, D)),                              # ln beta
                full((D, D)),                              # w2
                full((1, D)),                              # b2
                full((D, PV)),                             # fused prototypes [D, P*V]
                full((V, V)),                              # wout ([in, out])
                full((1, V)),                              # bout
                pl.BlockSpec(memory_space=pltpu.MemorySpace.SMEM),  # temperature (1,1)
            ],
            out_specs=pl.BlockSpec((tm, V), lambda i: (i, 0)),
        ),
        compiler_params=pltpu.CompilerParams(
            dimension_semantics=("parallel",)),
    )(
        x,
        params["w1"], params["b1"],
        params["ln_gamma"], params["ln_beta"],
        params["w2"], params["b2"],
        params["protos_cat"],
        params["wout"], params["bout"],
        params["temperature"],
    )
    return out[:N].reshape(B, S, V)


# --------------------------- parameter init ---------------------------------
def init_params(key, feature_dim, vocab_size, num_prototypes):
    D, V, P = feature_dim, vocab_size, num_prototypes
    ks = jax.random.split(key, 4)

    def xavier(k, fan_in, fan_out):
        limit = math.sqrt(6.0 / (fan_in + fan_out))
        # PyTorch nn.Linear weight is [out, in]; we store [in, out] for x @ W.
        return jax.random.uniform(k, (fan_in, fan_out), jnp.float32, -limit, limit)

    # prototypes ~ N(0,1), L2-normalized along feature dim (as in _init_weights)
    protos = jax.random.normal(ks[0], (V, P, D), jnp.float32)
    protos = protos / jnp.maximum(
        jnp.linalg.norm(protos, axis=-1, keepdims=True), NORM_EPS)
    # Fused kernel operand: [D, P*V]; column p*V + v holds prototype (v, p, :).
    protos_cat = jnp.transpose(protos, (2, 1, 0)).reshape(D, P * V)

    return {
        "w1": xavier(ks[1], D, D),
        "b1": jnp.zeros((1, D), jnp.float32),
        "ln_gamma": jnp.ones((1, D), jnp.float32),
        "ln_beta": jnp.zeros((1, D), jnp.float32),
        "w2": xavier(ks[2], D, D),
        "b2": jnp.zeros((1, D), jnp.float32),
        "protos": protos,            # [V, P, D]  (PyTorch-layout, used by reference)
        "protos_cat": protos_cat,    # [D, P*V]   (kernel operand)
        "wout": xavier(ks[3], V, V),  # [in, out]
        "bout": jnp.zeros((1, V), jnp.float32),
        "temperature": jnp.full((1, 1), 10.0, jnp.float32),
    }


# ----------------------------- pure-JAX reference ----------------------------
def reference(features, params):
    x = features.astype(jnp.float32)
    h = x @ params["w1"] + params["b1"][0]
    mu = jnp.mean(h, axis=-1, keepdims=True)
    var = jnp.mean((h - mu) ** 2, axis=-1, keepdims=True)
    h = (h - mu) / jnp.sqrt(var + LN_EPS) * params["ln_gamma"][0] + params["ln_beta"][0]
    h = 0.5 * h * (1.0 + jax.lax.erf(h / math.sqrt(2.0)))
    attn = jax.nn.sigmoid(h @ params["w2"] + params["b2"][0])
    wf = x * attn
    nf = wf / jnp.maximum(jnp.linalg.norm(wf, axis=-1, keepdims=True), NORM_EPS)

    B, S, D = x.shape
    V, P, _ = params["protos"].shape
    flat_protos = params["protos"].reshape(V * P, D)        # PyTorch flat view
    sims = nf.reshape(-1, D) @ flat_protos.T                # [N, V*P]
    max_sim = jnp.max(sims.reshape(B, S, V, P), axis=-1)    # [B, S, V]
    scaled = max_sim * params["temperature"][0, 0]
    return scaled @ params["wout"] + params["bout"][0]


# --------------------------------- main --------------------------------------
if __name__ == "__main__":
    key = jax.random.PRNGKey(0)
    k_feat, k_param = jax.random.split(key)

    features = jax.random.normal(k_feat, (BATCH, SEQ, FEATURE_DIM), jnp.float32)
    params = init_params(k_param, FEATURE_DIM, DIACRITIC_VOCAB, NUM_PROTOTYPES)

    logits = few_shot_diacritic_adapter(features, params)
    jax.block_until_ready(logits)

    ref = reference(features, params)
    assert logits.shape == (BATCH, SEQ, DIACRITIC_VOCAB)
    assert jnp.allclose(logits, ref, atol=1e-4, rtol=1e-4), "mismatch vs reference"

    print("KERNEL_OK")
</pallas_src>

<mosaic_0001>
module attributes {stable_mosaic.version = 11 : i64} {
  func.func @_adapter_kernel(%arg0: i32, %arg1: memref<16x32xf32, #tpu.memory_space<vmem>>, %arg2: memref<32x32xf32, #tpu.memory_space<vmem>>, %arg3: memref<1x32xf32, #tpu.memory_space<vmem>>, %arg4: memref<1x32xf32, #tpu.memory_space<vmem>>, %arg5: memref<1x32xf32, #tpu.memory_space<vmem>>, %arg6: memref<32x32xf32, #tpu.memory_space<vmem>>, %arg7: memref<1x32xf32, #tpu.memory_space<vmem>>, %arg8: memref<32x80xf32, #tpu.memory_space<vmem>>, %arg9: memref<16x16xf32, #tpu.memory_space<vmem>>, %arg10: memref<1x16xf32, #tpu.memory_space<vmem>>, %arg11: memref<1x1xf32, #tpu.memory_space<smem>>, %arg12: memref<16x16xf32, #tpu.memory_space<vmem>>) attributes {dimension_semantics = [#tpu.dimension_semantics<parallel>], iteration_bounds = array<i64: 1>, scalar_prefetch = 0 : i64, scratch_operands = 0 : i64, tpu.core_type = #tpu.core_type<tc>, window_params = [{transform_indices = @transform_0, window_bounds = array<i64: 16, 32>}, {pipeline_mode = #tpu.pipeline_mode<synchronous>, transform_indices = @transform_1, window_bounds = array<i64: 32, 32>}, {pipeline_mode = #tpu.pipeline_mode<synchronous>, transform_indices = @transform_2, window_bounds = array<i64: 1, 32>}, {pipeline_mode = #tpu.pipeline_mode<synchronous>, transform_indices = @transform_3, window_bounds = array<i64: 1, 32>}, {pipeline_mode = #tpu.pipeline_mode<synchronous>, transform_indices = @transform_4, window_bounds = array<i64: 1, 32>}, {pipeline_mode = #tpu.pipeline_mode<synchronous>, transform_indices = @transform_5, window_bounds = array<i64: 32, 32>}, {pipeline_mode = #tpu.pipeline_mode<synchronous>, transform_indices = @transform_6, window_bounds = array<i64: 1, 32>}, {pipeline_mode = #tpu.pipeline_mode<synchronous>, transform_indices = @transform_7, window_bounds = array<i64: 32, 80>}, {pipeline_mode = #tpu.pipeline_mode<synchronous>, transform_indices = @transform_8, window_bounds = array<i64: 16, 16>}, {pipeline_mode = #tpu.pipeline_mode<synchronous>, transform_indices = @transform_9, window_bounds = array<i64: 1, 16>}, {transform_indices = @transform_10, window_bounds = array<i64: 1, 1>}, {transform_indices = @transform_11, window_bounds = array<i64: 16, 16>}]} {
    %c0 = arith.constant 0 : index
    %c0_0 = arith.constant 0 : index
    %0 = vector.load %arg1[%c0, %c0_0] : memref<16x32xf32, #tpu.memory_space<vmem>>, vector<16x32xf32>
    %c0_1 = arith.constant 0 : index
    %c0_2 = arith.constant 0 : index
    %1 = vector.load %arg2[%c0_1, %c0_2] : memref<32x32xf32, #tpu.memory_space<vmem>>, vector<32x32xf32>
    %cst = arith.constant dense<0.000000e+00> : vector<16x32xf32>
    %2 = tpu.matmul %0, %1, %cst {dimension_numbers = #tpu.dot_dimension_numbers<[1], [0], [0], [1], [0, 0, 1, 1], [], []>} : vector<16x32xf32>, vector<32x32xf32>, vector<16x32xf32> -> vector<16x32xf32>
    %c0_3 = arith.constant 0 : index
    %c0_4 = arith.constant 0 : index
    %3 = vector.load %arg3[%c0_3, %c0_4] : memref<1x32xf32, #tpu.memory_space<vmem>>, vector<1x32xf32>
    %4 = vector.broadcast %3 : vector<1x32xf32> to vector<16x32xf32>
    %5 = arith.addf %2, %4 : vector<16x32xf32>
    %cst_5 = arith.constant dense<0.000000e+00> : vector<16xf32>
    %6 = vector.multi_reduction <add>, %5, %cst_5 [1] : vector<16x32xf32> to vector<16xf32>
    %7 = vector.shape_cast %6 : vector<16xf32> to vector<16x1xf32>
    %cst_6 = arith.constant 3.200000e+01 : f32
    %8 = vector.broadcast %cst_6 : f32 to vector<16x1xf32>
    %9 = arith.divf %7, %8 : vector<16x1xf32>
    %10 = vector.broadcast %9 : vector<16x1xf32> to vector<16x32xf32>
    %11 = arith.subf %5, %10 : vector<16x32xf32>
    %12 = vector.broadcast %9 : vector<16x1xf32> to vector<16x32xf32>
    %13 = arith.subf %5, %12 : vector<16x32xf32>
    %14 = arith.mulf %11, %13 : vector<16x32xf32>
    %cst_7 = arith.constant dense<0.000000e+00> : vector<16xf32>
    %15 = vector.multi_reduction <add>, %14, %cst_7 [1] : vector<16x32xf32> to vector<16xf32>
    %16 = vector.shape_cast %15 : vector<16xf32> to vector<16x1xf32>
    %cst_8 = arith.constant 3.200000e+01 : f32
    %17 = vector.broadcast %cst_8 : f32 to vector<16x1xf32>
    %18 = arith.divf %16, %17 : vector<16x1xf32>
    %19 = vector.broadcast %9 : vector<16x1xf32> to vector<16x32xf32>
    %20 = arith.subf %5, %19 : vector<16x32xf32>
    %cst_9 = arith.constant 9.99999974E-6 : f32
    %21 = vector.broadcast %cst_9 : f32 to vector<16x1xf32>
    %22 = arith.addf %18, %21 : vector<16x1xf32>
    %23 = math.rsqrt %22 : vector<16x1xf32>
    %24 = vector.broadcast %23 : vector<16x1xf32> to vector<16x32xf32>
    %25 = arith.mulf %20, %24 : vector<16x32xf32>
    %c0_10 = arith.constant 0 : index
    %c0_11 = arith.constant 0 : index
    %26 = vector.load %arg4[%c0_10, %c0_11] : memref<1x32xf32, #tpu.memory_space<vmem>>, vector<1x32xf32>
    %27 = vector.broadcast %26 : vector<1x32xf32> to vector<16x32xf32>
    %28 = arith.mulf %25, %27 : vector<16x32xf32>
    %c0_12 = arith.constant 0 : index
    %c0_13 = arith.constant 0 : index
    %29 = vector.load %arg5[%c0_12, %c0_13] : memref<1x32xf32, #tpu.memory_space<vmem>>, vector<1x32xf32>
    %30 = vector.broadcast %29 : vector<1x32xf32> to vector<16x32xf32>
    %31 = arith.addf %28, %30 : vector<16x32xf32>
    %cst_14 = arith.constant 5.000000e-01 : f32
    %32 = vector.broadcast %cst_14 : f32 to vector<16x32xf32>
    %33 = arith.mulf %32, %31 : vector<16x32xf32>
    %cst_15 = arith.constant 0.707106769 : f32
    %34 = vector.broadcast %cst_15 : f32 to vector<16x32xf32>
    %35 = arith.mulf %31, %34 : vector<16x32xf32>
    %36 = math.erf %35 : vector<16x32xf32>
    %cst_16 = arith.constant 1.000000e+00 : f32
    %37 = vector.broadcast %cst_16 : f32 to vector<16x32xf32>
    %38 = arith.addf %37, %36 : vector<16x32xf32>
    %39 = arith.mulf %33, %38 : vector<16x32xf32>
    %c0_17 = arith.constant 0 : index
    %c0_18 = arith.constant 0 : index
    %40 = vector.load %arg6[%c0_17, %c0_18] : memref<32x32xf32, #tpu.memory_space<vmem>>, vector<32x32xf32>
    %cst_19 = arith.constant dense<0.000000e+00> : vector<16x32xf32>
    %41 = tpu.matmul %39, %40, %cst_19 {dimension_numbers = #tpu.dot_dimension_numbers<[1], [0], [0], [1], [0, 0, 1, 1], [], []>} : vector<16x32xf32>, vector<32x32xf32>, vector<16x32xf32> -> vector<16x32xf32>
    %c0_20 = arith.constant 0 : index
    %c0_21 = arith.constant 0 : index
    %42 = vector.load %arg7[%c0_20, %c0_21] : memref<1x32xf32, #tpu.memory_space<vmem>>, vector<1x32xf32>
    %43 = vector.broadcast %42 : vector<1x32xf32> to vector<16x32xf32>
    %44 = arith.addf %41, %43 : vector<16x32xf32>
    %45 = arith.negf %44 : vector<16x32xf32>
    %46 = math.exp %45 : vector<16x32xf32>
    %cst_22 = arith.constant 1.000000e+00 : f32
    %47 = vector.broadcast %cst_22 : f32 to vector<16x32xf32>
    %48 = arith.addf %47, %46 : vector<16x32xf32>
    %49 = arith.divf %47, %48 : vector<16x32xf32>
    %50 = arith.mulf %0, %49 : vector<16x32xf32>
    %51 = arith.mulf %50, %50 : vector<16x32xf32>
    %cst_23 = arith.constant dense<0.000000e+00> : vector<16xf32>
    %52 = vector.multi_reduction <add>, %51, %cst_23 [1] : vector<16x32xf32> to vector<16xf32>
    %53 = vector.shape_cast %52 : vector<16xf32> to vector<16x1xf32>
    %cst_24 = arith.constant 1.000000e-24 : f32
    %54 = vector.broadcast %cst_24 : f32 to vector<16x1xf32>
    %55 = arith.maximumf %53, %54 : vector<16x1xf32>
    %56 = math.rsqrt %55 : vector<16x1xf32>
    %57 = vector.broadcast %56 : vector<16x1xf32> to vector<16x32xf32>
    %58 = arith.mulf %50, %57 : vector<16x32xf32>
    %c0_25 = arith.constant 0 : index
    %c0_26 = arith.constant 0 : index
    %59 = vector.load %arg8[%c0_25, %c0_26] : memref<32x80xf32, #tpu.memory_space<vmem>>, vector<32x80xf32>
    %cst_27 = arith.constant dense<0.000000e+00> : vector<16x80xf32>
    %60 = tpu.matmul %58, %59, %cst_27 {dimension_numbers = #tpu.dot_dimension_numbers<[1], [0], [0], [1], [0, 0, 1, 1], [], []>} : vector<16x32xf32>, vector<32x80xf32>, vector<16x80xf32> -> vector<16x80xf32>
    %61 = vector.extract_strided_slice %60 {offsets = [0, 0], sizes = [16, 16], strides = [1, 1]} : vector<16x80xf32> to vector<16x16xf32>
    %62 = vector.extract_strided_slice %60 {offsets = [0, 16], sizes = [16, 16], strides = [1, 1]} : vector<16x80xf32> to vector<16x16xf32>
    %63 = arith.maximumf %61, %62 : vector<16x16xf32>
    %64 = vector.extract_strided_slice %60 {offsets = [0, 32], sizes = [16, 16], strides = [1, 1]} : vector<16x80xf32> to vector<16x16xf32>
    %65 = arith.maximumf %63, %64 : vector<16x16xf32>
    %66 = vector.extract_strided_slice %60 {offsets = [0, 48], sizes = [16, 16], strides = [1, 1]} : vector<16x80xf32> to vector<16x16xf32>
    %67 = arith.maximumf %65, %66 : vector<16x16xf32>
    %68 = vector.extract_strided_slice %60 {offsets = [0, 64], sizes = [16, 16], strides = [1, 1]} : vector<16x80xf32> to vector<16x16xf32>
    %69 = arith.maximumf %67, %68 : vector<16x16xf32>
    %c0_28 = arith.constant 0 : index
    %c0_29 = arith.constant 0 : index
    %70 = vector.load %arg9[%c0_28, %c0_29] : memref<16x16xf32, #tpu.memory_space<vmem>>, vector<16x16xf32>
    %c0_30 = arith.constant 0 : index
    %c0_31 = arith.constant 0 : index
    %71 = memref.load %arg11[%c0_30, %c0_31] : memref<1x1xf32, #tpu.memory_space<smem>>
    %72 = vector.broadcast %71 : f32 to vector<16x16xf32>
    %73 = arith.mulf %70, %72 : vector<16x16xf32>
    %cst_32 = arith.constant dense<0.000000e+00> : vector<16x16xf32>
    %74 = tpu.matmul %69, %73, %cst_32 {dimension_numbers = #tpu.dot_dimension_numbers<[1], [0], [0], [1], [0, 0, 1, 1], [], []>} : vector<16x16xf32>, vector<16x16xf32>, vector<16x16xf32> -> vector<16x16xf32>
    %c0_33 = arith.constant 0 : index
    %c0_34 = arith.constant 0 : index
    %75 = vector.load %arg10[%c0_33, %c0_34] : memref<1x16xf32, #tpu.memory_space<vmem>>, vector<1x16xf32>
    %76 = vector.broadcast %75 : vector<1x16xf32> to vector<16x16xf32>
    %77 = arith.addf %74, %76 : vector<16x16xf32>
    %c0_35 = arith.constant 0 : index
    %c0_36 = arith.constant 0 : index
    %78 = vector.load %arg12[%c0_35, %c0_36] : memref<16x16xf32, #tpu.memory_space<vmem>>, vector<16x16xf32>
    tpu.vector_store %arg12[%c0_35, %c0_36], %77 {strides = array<i32>} : memref<16x16xf32, #tpu.memory_space<vmem>>, vector<16x16xf32>,
    return
  }
  func.func @transform_0(%arg0: i32) -> (i32, i32) {
    %c0_i32 = arith.constant 0 : i32
    %c0_i32_0 = arith.constant 0 : i32
    return %arg0, %c0_i32 : i32, i32
  }
  func.func @transform_1(%arg0: i32) -> (i32, i32) {
    %c0_i32 = arith.constant 0 : i32
    %c0_i32_0 = arith.constant 0 : i32
    %c0_i32_1 = arith.constant 0 : i32
    return %c0_i32, %c0_i32_0 : i32, i32
  }
  func.func @transform_2(%arg0: i32) -> (i32, i32) {
    %c0_i32 = arith.constant 0 : i32
    %c0_i32_0 = arith.constant 0 : i32
    %c0_i32_1 = arith.constant 0 : i32
    return %c0_i32, %c0_i32_0 : i32, i32
  }
  func.func @transform_3(%arg0: i32) -> (i32, i32) {
    %c0_i32 = arith.constant 0 : i32
    %c0_i32_0 = arith.constant 0 : i32
    %c0_i32_1 = arith.constant 0 : i32
    return %c0_i32, %c0_i32_0 : i32, i32
  }
  func.func @transform_4(%arg0: i32) -> (i32, i32) {
    %c0_i32 = arith.constant 0 : i32
    %c0_i32_0 = arith.constant 0 : i32
    %c0_i32_1 = arith.constant 0 : i32
    return %c0_i32, %c0_i32_0 : i32, i32
  }
  func.func @transform_5(%arg0: i32) -> (i32, i32) {
    %c0_i32 = arith.constant 0 : i32
    %c0_i32_0 = arith.constant 0 : i32
    %c0_i32_1 = arith.constant 0 : i32
    return %c0_i32, %c0_i32_0 : i32, i32
  }
  func.func @transform_6(%arg0: i32) -> (i32, i32) {
    %c0_i32 = arith.constant 0 : i32
    %c0_i32_0 = arith.constant 0 : i32
    %c0_i32_1 = arith.constant 0 : i32
    return %c0_i32, %c0_i32_0 : i32, i32
  }
  func.func @transform_7(%arg0: i32) -> (i32, i32) {
    %c0_i32 = arith.constant 0 : i32
    %c0_i32_0 = arith.constant 0 : i32
    %c0_i32_1 = arith.constant 0 : i32
    return %c0_i32, %c0_i32_0 : i32, i32
  }
  func.func @transform_8(%arg0: i32) -> (i32, i32) {
    %c0_i32 = arith.constant 0 : i32
    %c0_i32_0 = arith.constant 0 : i32
    %c0_i32_1 = arith.constant 0 : i32
    return %c0_i32, %c0_i32_0 : i32, i32
  }
  func.func @transform_9(%arg0: i32) -> (i32, i32) {
    %c0_i32 = arith.constant 0 : i32
    %c0_i32_0 = arith.constant 0 : i32
    %c0_i32_1 = arith.constant 0 : i32
    return %c0_i32, %c0_i32_0 : i32, i32
  }
  func.func @transform_10(%arg0: i32) -> (i32, i32) {
    %c0_i32 = arith.constant 0 : i32
    %c0_i32_0 = arith.constant 0 : i32
    %c0_i32_1 = arith.constant 0 : i32
    return %c0_i32, %c0_i32_0 : i32, i32
  }
  func.func @transform_11(%arg0: i32) -> (i32, i32) {
    %c0_i32 = arith.constant 0 : i32
    %c0_i32_0 = arith.constant 0 : i32
    return %arg0, %c0_i32 : i32, i32
  }
}

</mosaic_0001>

<bundles_post_ra>
// kernel: tpu_custom_call.1
= control target key start
LH: loop header
LB: loop body
LE: loop exit
PB: predicated region body
PF: predicated region fallthrough
CT: control target
= control target key end

     0   :  { %17 = vsyncpa [#allocation4], 0  ;;  %s1062_s0 = inlined_call_operand.hbm [shape: f32[16,32], index: 0, kind: input, shape index: {}]   ;;  %s1063_s1 = inlined_call_operand.hbm [shape: f32[32,32], index: 1, kind: input, shape index: {}]   ;;  %s1064_s2 = inlined_call_operand.vmem [shape: f32[1,32], index: 2, kind: input, shape index: {}]   ;;  %s1065_s3 = inlined_call_operand.vmem [shape: f32[1,32], index: 3, kind: input, shape index: {}]   ;;  %s1066_s4 = inlined_call_operand.vmem [shape: f32[1,32], index: 4, kind: input, shape index: {}]   ;;  %s1067_s5 = inlined_call_operand.hbm [shape: f32[32,32], index: 5, kind: input, shape index: {}]   ;;  %s1068_s6 = inlined_call_operand.vmem [shape: f32[1,32], index: 6, kind: input, shape index: {}]   ;;  %s1069_s7 = inlined_call_operand.hbm [shape: f32[32,80], index: 7, kind: input, shape index: {}]   ;;  %s1070_s8 = inlined_call_operand.vmem [shape: f32[16,16], index: 8, kind: input, shape index: {}]   ;;  %s1071_s9 = inlined_call_operand.vmem [shape: f32[1,16], index: 9, kind: input, shape index: {}]   ;;  %s1072_s10 = inlined_call_operand.<no memory space> [shape: f32[1,1], index: 10, kind: input, shape index: {}]   ;;  %s1073_s11 = inlined_call_operand.hbm [shape: f32[16,16], index: 11, kind: output, shape index: {}]  }
   0x1   :  { %18 = vsyncpa [#allocation7], 0 }
   0x2   :  { %19 = vsyncpa [#allocation10], 0 }
   0x3   :  { %20 = vsyncpa [#allocation5], 0  ;;  %s854_s17 = smov [#allocation6]   ;;  %s855_s19 = smov [#allocation3]  }
   0x4   :  { %s38_s18 = sshll.u32 %s854_s17, 4  ;;  %s26_s20 = sshll.u32 %s855_s19, 4  ;;  %s39_s18 = int_to_ptr.vmem [resolvable:$true] %s38_s18  ;;  %s925_s20 = int_to_ptr.vmem [resolvable:$true] %s26_s20 }
   0x5   :  { %s736_s23 = scalar_lea.hbm %s1063_s1, 512 }
   0x6   :  { %p737_p0 = scmp.ne.s32.totalorder %s1063_s1, %s736_s23  ;;  %p740_p1 = scmp.lt.u32.totalorder %s736_s23, %s1063_s1 }
   0x8   :  { %p742_p2 = pnand %p740_p1, %p737_p0 }
   0xa   :  { %745 = shalt.err (!%p742_p2)
}
   0xb   :  { %s746_s28 = scalar_lea.vmem %s39_s18, 512  ;;  %p751_p4 = scmp.lt.s32.totalorder %s39_s18, %s39_s18 }
   0xc   :  { %p747_p3 = scmp.ne.s32.totalorder %s39_s18, %s746_s28  ;;  %p752_p5 = scmp.lt.s32.totalorder %s746_s28, %s746_s28 }
   0xe   :  { %p753_p6 = por %p752_p5, %p751_p4 }
  0x10   :  { %p754_p7 = pnand %p753_p6, %p747_p3 }
  0x12   :  { %757 = shalt.err (!%p754_p7)
}
  0x13   :  { %s856_s29 = smov 128   ;;  %s857_s30 = smov 8  }
  0x14   :  { %44 = dma.hbm_to_vmem [thread:$0]  %s1063_s1, 512, %s39_s18, [#allocation7], %s856_s29, %s856_s29, %s857_s30  }
  0x15   :  { %s758_s16 = scalar_lea.hbm %s1062_s0, 256 }
  0x16   :  { %p759_p8 = scmp.ne.s32.totalorder %s1062_s0, %s758_s16  ;;  %p762_p9 = scmp.lt.u32.totalorder %s758_s16, %s1062_s0 }
  0x18   :  { %p764_p10 = pnand %p762_p9, %p759_p8 }
  0x1a   :  { %767 = shalt.err (!%p764_p10)
}
  0x1b   :  { %s768_s23 = scalar_lea.vmem %s925_s20, 256  ;;  %p773_p12 = scmp.lt.s32.totalorder %s925_s20, %s925_s20 }
  0x1c   :  { %p769_p11 = scmp.ne.s32.totalorder %s925_s20, %s768_s23  ;;  %p774_p13 = scmp.lt.s32.totalorder %s768_s23, %s768_s23 }
  0x1e   :  { %p775_p0 = por %p774_p13, %p773_p12 }
  0x20   :  { %p776_p1 = pnand %p775_p0, %p769_p11 }
  0x22   :  { %779 = shalt.err (!%p776_p1)
}
  0x23   :  { %32 = dma.hbm_to_vmem [thread:$0]  %s1062_s0, 256, %s925_s20, [#allocation4], %s856_s29, %s856_s29, %s857_s30  }
  0x24   :  { %s858_s24 = smov [#allocation8]   ;;  %s859_s26 = smov [#allocation9]  }
  0x25   :  { %s56_s25 = sshll.u32 %s858_s24, 4  ;;  %s70_s27 = sshll.u32 %s859_s26, 4  ;;  %s57_s25 = int_to_ptr.vmem [resolvable:$true] %s56_s25  ;;  %s962_s27 = int_to_ptr.vmem [resolvable:$true] %s70_s27 }
  0x26   :  { %s780_s13 = scalar_lea.hbm %s1067_s5, 512 }
  0x27   :  { %p781_p2 = scmp.ne.s32.totalorder %s1067_s5, %s780_s13  ;;  %p784_p3 = scmp.lt.u32.totalorder %s780_s13, %s1067_s5 }
  0x29   :  { %p786_p4 = pnand %p784_p3, %p781_p2 }
  0x2b   :  { %789 = shalt.err (!%p786_p4)
}
  0x2c   :  { %s790_s0 = scalar_lea.vmem %s57_s25, 512  ;;  %p795_p6 = scmp.lt.s32.totalorder %s57_s25, %s57_s25 }
  0x2d   :  { %p791_p5 = scmp.ne.s32.totalorder %s57_s25, %s790_s0  ;;  %p796_p7 = scmp.lt.s32.totalorder %s790_s0, %s790_s0 }
  0x2f   :  { %p797_p8 = por %p796_p7, %p795_p6 }
  0x31   :  { %p798_p9 = pnand %p797_p8, %p791_p5 }
  0x33   :  { %801 = shalt.err (!%p798_p9)
}
  0x34   :  { %62 = dma.hbm_to_vmem [thread:$0]  %s1067_s5, 512, %s57_s25, [#allocation7], %s856_s29, %s856_s29, %s857_s30  }
  0x35   :  { %s802_s23 = scalar_lea.hbm %s1069_s7, 512 }
  0x36   :  { %p803_p10 = scmp.ne.s32.totalorder %s1069_s7, %s802_s23  ;;  %p806_p11 = scmp.lt.u32.totalorder %s802_s23, %s1069_s7 }
  0x38   :  { %p808_p12 = pnand %p806_p11, %p803_p10 }
  0x3a   :  { %811 = shalt.err (!%p808_p12)
}
  0x3b   :  { %s812_s28 = scalar_lea.vmem %s962_s27, 512  ;;  %p817_p0 = scmp.lt.s32.totalorder %s962_s27, %s962_s27 }
  0x3c   :  { %p813_p13 = scmp.ne.s32.totalorder %s962_s27, %s812_s28  ;;  %p818_p1 = scmp.lt.s32.totalorder %s812_s28, %s812_s28 }
  0x3e   :  { %p819_p2 = por %p818_p1, %p817_p0 }
  0x40   :  { %p820_p3 = pnand %p819_p2, %p813_p13 }
  0x42   :  { %823 = shalt.err (!%p820_p3)
}
  0x43   :  { %76 = dma.hbm_to_vmem [thread:$0]  %s1069_s7, 512, %s962_s27, [#allocation10], %s856_s29, %s856_s29, %s857_s30  }
  0x44   :  { %846 = dma.done.wait [#allocation4], 256  }
  0x45   :  { %847 = vsyncadd [#allocation4], 4294967040 }
  0x46   :  { %848 = dma.done.wait [#allocation7], 1024  }
  0x47   :  { %849 = vsyncadd [#allocation7], 4294966272 }
  0x48   :  { %850 = dma.done.wait [#allocation10], 512  }
  0x49   :  { %851 = vsyncadd [#allocation10], 4294966784  ;;  %vm108_vm0 = vcmask 261120   ;;  %v97_v0 = vld [vmem:[#allocation6] sm:$0xff]  ;;  %v98_v1 = vld [vmem:[#allocation6 + $0x8] sm:$0xff]  ;;  %s860_s19 = smov 112  }
  0x4a   :  { %v99_v2 = vld [vmem:[#allocation6 + $0x10] sm:$0xff]  ;;  %v677_v3 = vpack.c.bf16 %v98_v1, %v97_v0  ;;  %v100_v4 = vld [vmem:[#allocation6 + $0x18] sm:$0xff]  ;;  %v245_v25 = vld [vmem:[#allocation8] sm:$0xff]  ;;  %s861_s21 = smov 96   ;;  %s862_s22 = smov 80   ;;  %vm497_vm1 = vcmask 130048  }
  0x4b   :  { %v999_v5 = vld [vmem:[#allocation3] sm:$0xff]  ;;  %v681_v6 = vpack.c.bf16 %v100_v4, %v99_v2  ;;  %v1003_v7 = vld [vmem:[#allocation3 + $0x8] sm:$0xff]  ;;  %v246_v26 = vld [vmem:[#allocation8 + $0x8] sm:$0xff]  ;;  %s864_s1 = smov [#allocation11]  }
  0x4c   :  { %645 = vmatprep.mubr.msk.f32.mxu0 %vm108_vm0, %v999_v5  ;;  %678 = vmatprep.subr.bf16.mxu0 %v677_v3  ;;  %v600_v8 = vld [vmem:[%s1064_s2] ss:$0 sm:$0xff]  ;;  %v685_v28 = vpack.c.bf16 %v246_v26, %v245_v25  ;;  %v248_v29 = vld [vmem:[#allocation8 + $0x18] sm:$0xff]  ;;  %s586_s18 = sshll.u32 %s864_s1, 4  ;;  %s587_s18 = int_to_ptr.vmem [resolvable:$true] %s586_s18 }
  0x4d   :  { %680 = vmatpush3.bf16.msra.mxu0 %v677_v3  ;;  %v247_v27 = vld [vmem:[#allocation8 + $0x10] sm:$0xff]  ;;  %s824_s24 = scalar_lea.vmem %s587_s18, 256  ;;  %p829_p5 = scmp.lt.s32.totalorder %s587_s18, %s587_s18 }
  0x4e   :  { %682 = vmatprep.subr.bf16.mxu0 %v681_v6  ;;  %v689_v30 = vpack.c.bf16 %v248_v29, %v247_v27  ;;  %686 = vmatprep.subr.bf16.mxu1 %v685_v28  ;;  %v603_v38 = vld [vmem:[%s1065_s3] ss:$0 sm:$0xff]  ;;  %v485_v27 = vld [vmem:[%s1070_s8 + $0x8] sm:$0xff]  ;;  %p825_p4 = scmp.ne.s32.totalorder %s587_s18, %s824_s24  ;;  %p830_p6 = scmp.lt.s32.totalorder %s824_s24, %s824_s24 }
  0x4f   :  { %688 = vmatpush3.bf16.msra.mxu1 %v685_v28  ;;  %v604_v40 = vld [vmem:[%s1066_s4] ss:$0 sm:$0xff]  ;;  %v487_v28 = vstv %s1072_s10 }
  0x50   :  { %690 = vmatprep.subr.bf16.mxu1 %v689_v30  ;;  %v605_v57 = vld [vmem:[%s1068_s6] ss:$0 sm:$0xff]  ;;  %p831_p7 = por %p830_p6, %p829_p5 }
  0x51   :  { %684 = vmatpush3.bf16.msra.mxu0 %v681_v6  ;;  %v484_v26 = vld [vmem:[%s1070_s8] sm:$0xff]  ;;  %s863_s8 = smov 64  }
  0x52   :  { %v488_v29 = vmul.f32 %v487_v28, %v484_v26  ;;  %p832_p8 = pnand %p831_p7, %p825_p4 }
  0x53   :  { %692 = vmatpush3.bf16.msra.mxu1 %v689_v30  ;;  %v489_v30 = vmul.f32 %v487_v28, %v485_v27 }
  0x54   :  { %646 = vmatmul.mubr.msk.f32.vlgmr.msra.gmra.mrb[0].mxu0 %vm108_vm0, %v1003_v7 }
 0x127   :  { %v647_v9 = vpop.f32.mrb[0].mxu0 }
 0x128   :  { %v181_v10 = vpop.f32.mrb[1].mxu0  ;;  %v187_v12 = vadd.f32 %v647_v9, %v600_v8 }
 0x129   :  { %v182_v11 = vadd.f32 %v600_v8, %v181_v10 }
 0x12a   :  { %v193_v14 = vsel %vm108_vm0, %v187_v12, 0.0 }
 0x12b   :  { %v190_v13 = vsel %vm108_vm0, %v182_v11, 0.0 }
 0x12c   :  { %191 = vadd.xlane.f32.xlu0 %v190_v13 }
 0x130   :  { %194 = vadd.xlane.f32.xlu0 %v193_v14  ;;  %v365_v14 = vld [vmem:[#allocation9] sm:$0xff] }
 0x1b9   :  { %v192_v15 = vpop.xlane.xlu0 %191 }
 0x1ba   :  { %v197_v16 = vmul.f32 0.03125, %v192_v15  ;;  %v366_v15 = vld [vmem:[#allocation9 + $0x8] sm:$0xff] }
 0x1bc   :  { %v199_v17 = vsub.f32 %v182_v11, %v197_v16  ;;  %v367_v16 = vld [vmem:[#allocation9 + $0x10] sm:$0xff] }
 0x1bd   :  { %v195_v18 = vpop.xlane.xlu0 %194 }
 0x1be   :  { %v198_v19 = vmul.f32 0.03125, %v195_v18  ;;  %v201_v20 = vmul.f32 %v199_v17, %v199_v17  ;;  %v368_v18 = vld [vmem:[#allocation9 + $0x18] sm:$0xff] }
 0x1c0   :  { %v200_v21 = vsub.f32 %v187_v12, %v198_v19  ;;  %v203_v22 = vsel %vm108_vm0, %v201_v20, 0.0  ;;  %v697_v19 = vpack.c.bf16 %v368_v18, %v367_v16 }
 0x1c1   :  { %204 = vadd.xlane.f32.xlu1 %v203_v22 }
 0x1c2   :  { %v202_v23 = vmul.f32 %v200_v21, %v200_v21 }
 0x1c4   :  { %v206_v24 = vsel %vm108_vm0, %v202_v23, 0.0 }
 0x1c5   :  { %207 = vadd.xlane.f32.xlu1 %v206_v24 }
 0x24e   :  { %v205_v31 = vpop.xlane.xlu1 %204 }
 0x24f   :  { %v209_v32 = vmul.f32 0.03125, %v205_v31 }
 0x251   :  { %v211_v33 = vadd.f32 1e-05, %v209_v32  ;;  %v701_v32 = vpack.c.bf16 %v489_v30, %v488_v29 }
 0x252   :  { %v208_v34 = vpop.xlane.xlu1 %207 }
 0x253   :  { %716 = vrsqrt.f32 %v211_v33  ;;  %v210_v35 = vmul.f32 0.03125, %v208_v34  ;;  %702 = vmatprep.subr.bf16.mxu1 %v701_v32 }
 0x255   :  { %v212_v36 = vadd.f32 1e-05, %v210_v35 }
 0x257   :  { %718 = vrsqrt.f32 %v212_v36 }
 0x25d   :  { %v717_v37 = vpop.eup %716 }
 0x25e   :  { %v215_v39 = vmul.f32 %v717_v37, %v199_v17  ;;  %v693_v17 = vpack.c.bf16 %v366_v15, %v365_v14 }
 0x260   :  { %v224_v41 = vmul.f32 %v603_v38, %v215_v39  ;;  %694 = vmatprep.subr.bf16.mxu0 %v693_v17 }
 0x261   :  { %v719_v42 = vpop.eup %718  ;;  %696 = vmatpush3.bf16.msra.mxu0 %v693_v17 }
 0x262   :  { %v216_v43 = vmul.f32 %v719_v42, %v200_v21  ;;  %v233_v44 = vadd.f32 %v604_v40, %v224_v41  ;;  %698 = vmatprep.subr.bf16.mxu0 %v697_v19 }
 0x264   :  { %v225_v45 = vmul.f32 %v603_v38, %v216_v43  ;;  %v237_v46 = vmul.f32 0.70710677, %v233_v44  ;;  %v235_v50 = vmul.f32 0.5, %v233_v44 }
 0x265   :  { %700 = vmatpush3.bf16.msra.mxu0 %v697_v19 }
 0x266   :  { %v234_v47 = vadd.f32 %v604_v40, %v225_v45  ;;  %720 = verf.f32 %v237_v46 }
 0x268   :  { %v238_v48 = vmul.f32 0.70710677, %v234_v47  ;;  %v236_v54 = vmul.f32 0.5, %v234_v47 }
 0x26a   :  { %722 = verf.f32 %v238_v48 }
 0x270   :  { %v721_v49 = vpop.eup %720 }
 0x271   :  { %v241_v51 = vadd.f32 1.0, %v721_v49 }
 0x273   :  { %v243_v52 = vmul.f32 %v241_v51, %v235_v50  ;;  %v612_v50 = vld [vmem:[%s1071_s9] ss:$0 sm:$0xff] }
 0x274   :  { %v723_v53 = vpop.eup %722 }
 0x275   :  { %656 = vmatprep.mubr.msk.f32.mxu1 %vm108_vm0, %v243_v52  ;;  %v242_v55 = vadd.f32 1.0, %v723_v53 }
 0x277   :  { %v244_v56 = vmul.f32 %v242_v55, %v236_v54 }
 0x279   :  { %657 = vmatmul.mubr.msk.f32.vlgmr.msra.gmra.mrb[0].mxu1 %vm108_vm0, %v244_v56 }
 0x27a   :  { %704 = vmatpush3.bf16.msra.mxu1 %v701_v32 }
 0x34c   :  { %v658_v58 = vpop.f32.mrb[0].mxu1 }
 0x34d   :  { %v334_v59 = vadd.f32 %v658_v58, %v605_v57  ;;  %v328_v60 = vpop.f32.mrb[1].mxu1 }
 0x34e   :  { %v329_v61 = vadd.f32 %v605_v57, %v328_v60 }
 0x34f   :  { %v609_v62 = vmul.f32 -1.442695, %v334_v59 }
 0x350   :  { %v608_v63 = vmul.f32 -1.442695, %v329_v61 }
 0x351   :  { %724 = vpow2.f32 %v609_v62 }
 0x352   :  { %726 = vpow2.f32 %v608_v63 }
 0x35b   :  { %v725_v0 = vpop.eup %724 }
 0x35c   :  { %v727_v1 = vpop.eup %726  ;;  %v344_v2 = vadd.f32 1.0, %v725_v0 }
 0x35d   :  { %v343_v3 = vadd.f32 1.0, %v727_v1 }
 0x35e   :  { %728 = vrcp.f32 %v344_v2 }
 0x35f   :  { %730 = vrcp.f32 %v343_v3 }
 0x368   :  { %v729_v4 = vpop.eup %728 }
 0x369   :  { %v731_v6 = vpop.eup %730  ;;  %v350_v8 = vmul.f32 %v729_v4, %v1003_v7 }
 0x36a   :  { %v349_v9 = vmul.f32 %v731_v6, %v999_v5 }
 0x36b   :  { %v352_v10 = vmul.f32 %v350_v8, %v350_v8 }
 0x36c   :  { %v351_v11 = vmul.f32 %v349_v9, %v349_v9 }
 0x36d   :  { %v356_v12 = vsel %vm108_vm0, %v352_v10, 0.0 }
 0x36e   :  { %357 = vadd.xlane.f32.xlu1 %v356_v12  ;;  %v353_v13 = vsel %vm108_vm0, %v351_v11, 0.0 }
 0x36f   :  { %354 = vadd.xlane.f32.xlu0 %v353_v13 }
 0x3fb   :  { %v358_v7 = vpop.xlane.xlu1 %357 }
 0x3fc   :  { %v360_v5 = vmax.f32 %v358_v7, 1e-24  ;;  %v355_v20 = vpop.xlane.xlu0 %354 }
 0x3fd   :  { %v359_v21 = vmax.f32 %v355_v20, 1e-24 }
 0x3fe   :  { %732 = vrsqrt.f32 %v360_v5 }
 0x3ff   :  { %734 = vrsqrt.f32 %v359_v21 }
 0x408   :  { %v733_v22 = vpop.eup %732 }
 0x409   :  { %v735_v23 = vpop.eup %734  ;;  %v364_v25 = vmul.f32 %v733_v22, %v350_v8 }
 0x40a   :  { %v363_v24 = vmul.f32 %v735_v23, %v349_v9 }
 0x40c   :  { %667 = vmatprep.mubr.msk.f32.mxu0 %vm108_vm0, %v363_v24 }
 0x40d   :  { %668 = vmatmul.mubr.msk.f32.vlgmr.msra.gmra.mrb[2].mxu0 %vm108_vm0, %v364_v25 }
 0x4e0   :  { %v669_v31 = vpop.f32.mrb[2].mxu0 }
 0x4e1   :  { %454 = vrot.lane.b32.xlu1 %v669_v31, %s860_s19  ;;  %v441_v33 = vpop.f32.mrb[3].mxu0 }
 0x4e2   :  { %452 = vrot.lane.b32.xlu0 %v441_v33, %s860_s19 }
 0x4e5   :  { %462 = vrot.lane.b32.xlu1 %v669_v31, %s861_s21 }
 0x4e6   :  { %468 = vrot.lane.b32.xlu0 %v441_v33, %s862_s22 }
 0x4e9   :  { %460 = vrot.lane.b32.xlu1 %v441_v33, %s861_s21 }
 0x4ea   :  { %476 = vrot.lane.b32.xlu0 %v441_v33, %s863_s8 }
 0x4ed   :  { %470 = vrot.lane.b32.xlu1 %v669_v31, %s862_s22 }
 0x4f1   :  { %478 = vrot.lane.b32.xlu1 %v669_v31, %s863_s8 }
 0x553   :  { %v455_v34 = vpop.permute.xlu1 %454 }
 0x554   :  { %v453_v35 = vpop.permute.xlu0 %452  ;;  %v459_v41 = vmax.f32 %v669_v31, %v455_v34 }
 0x555   :  { %v458_v38 = vmax.f32 %v441_v33, %v453_v35 }
 0x557   :  { %v463_v36 = vpop.permute.xlu1 %462 }
 0x558   :  { %v469_v37 = vpop.permute.xlu0 %468  ;;  %v467_v45 = vmax.f32 %v459_v41, %v463_v36 }
 0x55b   :  { %v461_v39 = vpop.permute.xlu1 %460 }
 0x55c   :  { %v466_v40 = vmax.f32 %v458_v38, %v461_v39  ;;  %v477_v43 = vpop.permute.xlu0 %476 }
 0x55e   :  { %v474_v42 = vmax.f32 %v466_v40, %v469_v37 }
 0x55f   :  { %v471_v44 = vpop.permute.xlu1 %470 }
 0x560   :  { %v482_v46 = vmax.f32 %v474_v42, %v477_v43  ;;  %v475_v47 = vmax.f32 %v467_v45, %v471_v44 }
 0x562   :  { %674 = vmatprep.mubr.msk.f32.mxu1 %vm497_vm1, %v482_v46 }
 0x563   :  { %v479_v48 = vpop.permute.xlu1 %478 }
 0x564   :  { %v483_v49 = vmax.f32 %v475_v47, %v479_v48 }
 0x566   :  { %675 = vmatmul.mubr.msk.f32.vlgmr.msra.gmra.mrb[2].mxu1 %vm497_vm1, %v483_v49 }
 0x639   :  { %v676_v51 = vpop.f32.mrb[2].mxu1 }
 0x63a   :  { %v576_v52 = vadd.f32 %v676_v51, %v612_v50  ;;  %v570_v53 = vpop.f32.mrb[3].mxu1 }
 0x63b   :  { %v571_v54 = vadd.f32 %v612_v50, %v570_v53 }
 0x63c   :  { %580 = vst.msk [vmem:[#allocation11 + $0x8] sm:$0xff] %vm497_vm1, %v576_v52 }
 0x63d   :  { %579 = vst.msk [vmem:[#allocation11] sm:$0xff] %vm497_vm1, %v571_v54 }
 0x63e   :  { %835 = shalt.err (!%p832_p8)
}
 0x63f   :  { %s836_s28 = scalar_lea.hbm %s1073_s11, 256 }
 0x640   :  { %p837_p9 = scmp.ne.s32.totalorder %s1073_s11, %s836_s28  ;;  %p840_p10 = scmp.lt.u32.totalorder %s836_s28, %s1073_s11 }
 0x642   :  { %p842_p11 = pnand %p840_p10, %p837_p9 }
 0x644   :  { %845 = shalt.err (!%p842_p11)
}
 0x645   :  { %592 = dma.vmem_to_hbm [thread:$0]  %s587_s18, 256, %s1073_s11, [#allocation5], %s856_s29, %s856_s29, %s857_s30  }
 0x646   :  { %852 = dma.done.wait [#allocation5], 256  }
 0x647   :  { %853 = vsyncadd [#allocation5], 4294967040 }
 0x648   :  { %596 = vsyncpa [#allocation4], 1 }
 0x649   :  { %597 = vsyncpa [#allocation7], 1 }
 0x64a   :  { %598 = vsyncpa [#allocation10], 1 }
 0x64b   :  { %599 = vsyncpa [#allocation5], 1 }

</bundles_post_ra>
